<compile_context>
chip_gen: v7x
topology: tpu7x:2x2x1
jax: 0.10.0
libtpu: 0.0.40
codegen_flags: <defaults>
</compile_context>

<pallas_src>
import math
from functools import partial

import jax
import jax.numpy as jnp
from jax import lax
from jax.experimental import pallas as pl
from jax.experimental.pallas import tpu as pltpu


# ----------------------------------------------------------------------------
# Kernel: one full MHA forward per grid step (grid axis = batch).
# ----------------------------------------------------------------------------
def _mha_kernel(x_ref, wqkv_ref, bqkv_ref, wo_ref, bo_ref, out_ref,
                *, num_heads, key_dim, masked, fused_self):
    E = num_heads * key_dim

    if fused_self:
        # Self-attention: one (S, D) @ (D, 3E) matmul for Q|K|V.
        x = x_ref[...]                                     # (S, D)
        S = x.shape[0]
        qkv = (jnp.dot(x, wqkv_ref[...], preferred_element_type=jnp.float32)
               + bqkv_ref[...])                            # (S, 3E)
        Q, K, V = qkv[:, :E], qkv[:, E:2 * E], qkv[:, 2 * E:]
    else:
        # Cross-attention: one batched (3,S,D) x (3,D,E) projection.
        x = x_ref[...]                                     # (3, S, D)
        S = x.shape[1]
        qkv = (jnp.einsum("bsd,bde->bse", x, wqkv_ref[...],
                          preferred_element_type=jnp.float32)
               + bqkv_ref[...])                            # (3, S, E)
        Q, K, V = qkv[0], qkv[1], qkv[2]

    # Head-batched layout (H, S, dk) via static lane slices + leading-dim stack.
    def to_heads(M):
        return jnp.stack(
            [M[:, h * key_dim:(h + 1) * key_dim] for h in range(num_heads)],
            axis=0)

    Qh, Kh, Vh = to_heads(Q), to_heads(K), to_heads(V)     # (H, S, dk)

    # Scores for all heads in one batched matmul; 1/sqrt(dk) already folded
    # into the Q weights/bias.
    A = jnp.einsum("hqd,hkd->hqk", Qh, Kh,
                   preferred_element_type=jnp.float32)     # (H, S, S)

    if masked:
        # Strict causal mask, applied once to the batched scores.
        # TODO(synk): torch ref uses `tril(A)==0`, which also masks exact-zero
        # lower-triangle scores (and can NaN a row); we mask above-diagonal only.
        row = lax.broadcasted_iota(jnp.int32, (S, S), 0)
        col = lax.broadcasted_iota(jnp.int32, (S, S), 1)
        A = jnp.where((col <= row)[None, :, :], A, -jnp.inf)

    # Softmax over keys (torch dim=1) — exact reciprocal (no approx).
    m = jnp.max(A, axis=-1, keepdims=True)
    e = jnp.exp(A - m)
    P = e / jnp.sum(e, axis=-1, keepdims=True)

    ctx = jnp.einsum("hqk,hkd->hqd", P, Vh,
                     preferred_element_type=jnp.float32)   # (H, S, dk)
    concat = jnp.concatenate([ctx[h] for h in range(num_heads)], axis=1)  # (S, E)

    out_ref[...] = (jnp.dot(concat, wo_ref[...],
                            preferred_element_type=jnp.float32)
                    + bo_ref[...])


# ----------------------------------------------------------------------------
# Wrapper: fuses/scales weights, dedupes self-attention operands, adds a
# batch grid axis, and squeezes back for the original 2-D module semantics.
# ----------------------------------------------------------------------------
def multi_head_attention(query, key, value, params, num_heads, masked=False):
    E = params["wq"].shape[1]
    key_dim = E // num_heads
    D = params["wq"].shape[0]
    scale = 1.0 / math.sqrt(key_dim)

    fused_self = (query is key) and (key is value)
    squeeze = query.ndim == 2
    if squeeze:
        query = query[None]
        key = query if fused_self else key[None]
        value = query if fused_self else value[None]
    B, S, _ = query.shape

    if fused_self:
        # Single activation, single fused (D, 3E) weight; scale folded into Q.
        wqkv = jnp.concatenate(
            [params["wq"] * scale, params["wk"], params["wv"]], axis=1)   # (D, 3E)
        bqkv = jnp.concatenate(
            [params["bq"] * scale, params["bk"], params["bv"]], axis=1)   # (1, 3E)
        acts = query                                                      # (B, S, D)
        act_spec = pl.BlockSpec((None, S, D), lambda b: (b, 0, 0))
        w_spec = pl.BlockSpec((D, 3 * E), lambda b: (0, 0))
        b_spec = pl.BlockSpec((1, 3 * E), lambda b: (0, 0))
    else:
        # Stacked activations + stacked (3, D, E) weights for one batched dot.
        wqkv = jnp.stack(
            [params["wq"] * scale, params["wk"], params["wv"]], axis=0)   # (3, D, E)
        bqkv = jnp.stack(
            [params["bq"] * scale, params["bk"], params["bv"]], axis=0)   # (3, 1, E)
        acts = jnp.stack([query, key, value], axis=1)                     # (B, 3, S, D)
        act_spec = pl.BlockSpec((None, 3, S, D), lambda b: (b, 0, 0, 0))
        w_spec = pl.BlockSpec((3, D, E), lambda b: (0, 0, 0))
        b_spec = pl.BlockSpec((3, 1, E), lambda b: (0, 0, 0))

    kern = partial(_mha_kernel, num_heads=num_heads, key_dim=key_dim,
                   masked=masked, fused_self=fused_self)

    out = pl.pallas_call(
        kern,
        grid=(B,),
        out_shape=jax.ShapeDtypeStruct((B, S, D), jnp.float32),
        in_specs=[act_spec, w_spec, b_spec,
                  pl.BlockSpec((E, D), lambda b: (0, 0)),
                  pl.BlockSpec((1, D), lambda b: (0, 0))],
        out_specs=pl.BlockSpec((None, S, D), lambda b: (b, 0, 0)),
        compiler_params=pltpu.CompilerParams(
            dimension_semantics=("parallel",)),
    )(acts, wqkv, bqkv, params["wo"], params["bo"])

    return out[0] if squeeze else out


# ----------------------------------------------------------------------------
# Parameters (deterministic, mimicking nn.Linear default uniform init), with
# per-head weights stacked along the output axis so column block
# [h*dk:(h+1)*dk] == head h (matches torch.cat(heads, dim=1)).
# ----------------------------------------------------------------------------
def _init_linear(key, fan_in, fan_out):
    kw, kb = jax.random.split(key)
    bound = 1.0 / math.sqrt(fan_in)
    w = jax.random.uniform(kw, (fan_in, fan_out), jnp.float32, -bound, bound)
    b = jax.random.uniform(kb, (fan_out,), jnp.float32, -bound, bound)
    return w, b


def init_mha_params(key, input_dim, key_dim, num_heads):
    kq, kk, kv, ko = jax.random.split(key, 4)

    def stacked(k):
        ws, bs = [], []
        for sub in jax.random.split(k, num_heads):
            w, b = _init_linear(sub, input_dim, key_dim)
            ws.append(w)
            bs.append(b)
        return jnp.concatenate(ws, axis=1), jnp.concatenate(bs, 0).reshape(1, -1)

    wq, bq = stacked(kq)
    wk, bk = stacked(kk)
    wv, bv = stacked(kv)
    wo, bo = _init_linear(ko, key_dim * num_heads, input_dim)
    return dict(wq=wq, wk=wk, wv=wv, bq=bq, bk=bk, bv=bv,
                wo=wo, bo=bo.reshape(1, -1))


# ----------------------------------------------------------------------------
# Pure-JAX reference (same math, no Pallas) for correctness checks.
# ----------------------------------------------------------------------------
def mha_reference(query, key, value, params, num_heads, masked=False):
    S = query.shape[0]
    key_dim = params["wq"].shape[1] // num_heads
    Q = query @ params["wq"] + params["bq"]
    K = key @ params["wk"] + params["bk"]
    V = value @ params["wv"] + params["bv"]
    heads = []
    for h in range(num_heads):
        sl = slice(h * key_dim, (h + 1) * key_dim)
        A = (Q[:, sl] @ K[:, sl].T) / math.sqrt(key_dim)
        if masked:
            A = jnp.where(jnp.tril(jnp.ones((S, S), dtype=bool)), A, -jnp.inf)
        P = jax.nn.softmax(A, axis=1)
        heads.append(P @ V[:, sl])
    return jnp.concatenate(heads, axis=1) @ params["wo"] + params["bo"]


# ----------------------------------------------------------------------------
if __name__ == "__main__":
    S, D, H, DK = 8, 32, 8, 4   # seq=8, input_dimension=32, num_heads=8, key_dimension=4
    B = 4                       # batched demo (amortizes launch overhead)

    key = jax.random.PRNGKey(0)
    kq, kk, kv, kb, kp = jax.random.split(key, 5)
    q = jax.random.normal(kq, (S, D), jnp.float32)
    k = jax.random.normal(kk, (S, D), jnp.float32)
    v = jax.random.normal(kv, (S, D), jnp.float32)
    qb = jax.random.normal(kb, (B, S, D), jnp.float32)
    params = init_mha_params(kp, D, DK, H)

    # cross-attention, unmasked (module default semantics, 2-D inputs)
    out = multi_head_attention(q, k, v, params, num_heads=H, masked=False)
    # self-attention, masked (fused single-matmul QKV path + causal mask)
    out_masked = multi_head_attention(q, q, q, params, num_heads=H, masked=True)
    # batched self-attention, masked (grid=(B,), parallel axis for v7x)
    out_b = multi_head_attention(qb, qb, qb, params, num_heads=H, masked=True)
    out, out_masked, out_b = jax.block_until_ready((out, out_masked, out_b))

    ref = mha_reference(q, k, v, params, H, masked=False)
    ref_masked = mha_reference(q, q, q, params, H, masked=True)
    ref_b = jnp.stack([mha_reference(qb[i], qb[i], qb[i], params, H, masked=True)
                       for i in range(B)])

    assert out.shape == (S, D), out.shape
    assert out_masked.shape == (S, D), out_masked.shape
    assert out_b.shape == (B, S, D), out_b.shape
    assert bool(jnp.all(jnp.isfinite(out)))
    assert bool(jnp.all(jnp.isfinite(out_masked)))
    assert bool(jnp.all(jnp.isfinite(out_b)))
    assert bool(jnp.allclose(out, ref, atol=1e-3, rtol=1e-3))
    assert bool(jnp.allclose(out_masked, ref_masked, atol=1e-3, rtol=1e-3))
    assert bool(jnp.allclose(out_b, ref_b, atol=1e-3, rtol=1e-3))
    print("KERNEL_OK")
</pallas_src>

<mosaic_0001>
module attributes {stable_mosaic.version = 11 : i64} {
  func.func @_mha_kernel(%arg0: i32, %arg1: memref<1x3x8x32xf32, #tpu.memory_space<vmem>>, %arg2: memref<3x32x32xf32, #tpu.memory_space<vmem>>, %arg3: memref<3x1x32xf32, #tpu.memory_space<vmem>>, %arg4: memref<32x32xf32, #tpu.memory_space<vmem>>, %arg5: memref<1x32xf32, #tpu.memory_space<vmem>>, %arg6: memref<1x8x32xf32, #tpu.memory_space<vmem>>) attributes {dimension_semantics = [#tpu.dimension_semantics<parallel>], iteration_bounds = array<i64: 1>, scalar_prefetch = 0 : i64, scratch_operands = 0 : i64, tpu.core_type = #tpu.core_type<tc>, window_params = [{transform_indices = @transform_0, window_bounds = array<i64: 1, 3, 8, 32>}, {pipeline_mode = #tpu.pipeline_mode<synchronous>, transform_indices = @transform_1, window_bounds = array<i64: 3, 32, 32>}, {pipeline_mode = #tpu.pipeline_mode<synchronous>, transform_indices = @transform_2, window_bounds = array<i64: 3, 1, 32>}, {pipeline_mode = #tpu.pipeline_mode<synchronous>, transform_indices = @transform_3, window_bounds = array<i64: 32, 32>}, {pipeline_mode = #tpu.pipeline_mode<synchronous>, transform_indices = @transform_4, window_bounds = array<i64: 1, 32>}, {transform_indices = @transform_5, window_bounds = array<i64: 1, 8, 32>}]} {
    %c0 = arith.constant 0 : index
    %c0_0 = arith.constant 0 : index
    %c0_1 = arith.constant 0 : index
    %c0_2 = arith.constant 0 : index
    %0 = vector.load %arg1[%c0, %c0_0, %c0_1, %c0_2] : memref<1x3x8x32xf32, #tpu.memory_space<vmem>>, vector<1x3x8x32xf32>
    %1 = vector.shape_cast %0 : vector<1x3x8x32xf32> to vector<3x8x32xf32>
    %c0_3 = arith.constant 0 : index
    %c0_4 = arith.constant 0 : index
    %c0_5 = arith.constant 0 : index
    %2 = vector.load %arg2[%c0_3, %c0_4, %c0_5] : memref<3x32x32xf32, #tpu.memory_space<vmem>>, vector<3x32x32xf32>
    "tpu.trace_start"() <{level = 10 : i32, message = "bsd,bde->bse"}> : () -> ()
    %cst = arith.constant dense<0.000000e+00> : vector<3x8x32xf32>
    %3 = tpu.matmul %1, %2, %cst {dimension_numbers = #tpu.dot_dimension_numbers<[2], [1], [1], [2], [0, 0, 0, 1, 1, 2], [0], [0]>} : vector<3x8x32xf32>, vector<3x32x32xf32>, vector<3x8x32xf32> -> vector<3x8x32xf32>
    "tpu.trace_stop"() : () -> ()
    %c0_6 = arith.constant 0 : index
    %c0_7 = arith.constant 0 : index
    %c0_8 = arith.constant 0 : index
    %4 = vector.load %arg3[%c0_6, %c0_7, %c0_8] : memref<3x1x32xf32, #tpu.memory_space<vmem>>, vector<3x1x32xf32>
    %5 = vector.broadcast %4 : vector<3x1x32xf32> to vector<3x8x32xf32>
    %6 = arith.addf %3, %5 : vector<3x8x32xf32>
    %7 = vector.extract_strided_slice %6 {offsets = [0, 0, 0], sizes = [1, 8, 32], strides = [1, 1, 1]} : vector<3x8x32xf32> to vector<1x8x32xf32>
    %8 = vector.shape_cast %7 : vector<1x8x32xf32> to vector<8x32xf32>
    %9 = vector.extract_strided_slice %6 {offsets = [1, 0, 0], sizes = [1, 8, 32], strides = [1, 1, 1]} : vector<3x8x32xf32> to vector<1x8x32xf32>
    %10 = vector.shape_cast %9 : vector<1x8x32xf32> to vector<8x32xf32>
    %11 = vector.extract_strided_slice %6 {offsets = [2, 0, 0], sizes = [1, 8, 32], strides = [1, 1, 1]} : vector<3x8x32xf32> to vector<1x8x32xf32>
    %12 = vector.shape_cast %11 : vector<1x8x32xf32> to vector<8x32xf32>
    %13 = vector.extract_strided_slice %8 {offsets = [0, 0], sizes = [8, 4], strides = [1, 1]} : vector<8x32xf32> to vector<8x4xf32>
    %14 = vector.extract_strided_slice %8 {offsets = [0, 4], sizes = [8, 4], strides = [1, 1]} : vector<8x32xf32> to vector<8x4xf32>
    %15 = vector.extract_strided_slice %8 {offsets = [0, 8], sizes = [8, 4], strides = [1, 1]} : vector<8x32xf32> to vector<8x4xf32>
    %16 = vector.extract_strided_slice %8 {offsets = [0, 12], sizes = [8, 4], strides = [1, 1]} : vector<8x32xf32> to vector<8x4xf32>
    %17 = vector.extract_strided_slice %8 {offsets = [0, 16], sizes = [8, 4], strides = [1, 1]} : vector<8x32xf32> to vector<8x4xf32>
    %18 = vector.extract_strided_slice %8 {offsets = [0, 20], sizes = [8, 4], strides = [1, 1]} : vector<8x32xf32> to vector<8x4xf32>
    %19 = vector.extract_strided_slice %8 {offsets = [0, 24], sizes = [8, 4], strides = [1, 1]} : vector<8x32xf32> to vector<8x4xf32>
    %20 = vector.extract_strided_slice %8 {offsets = [0, 28], sizes = [8, 4], strides = [1, 1]} : vector<8x32xf32> to vector<8x4xf32>
    %21 = vector.shape_cast %13 : vector<8x4xf32> to vector<1x8x4xf32>
    %22 = vector.shape_cast %14 : vector<8x4xf32> to vector<1x8x4xf32>
    %23 = vector.shape_cast %15 : vector<8x4xf32> to vector<1x8x4xf32>
    %24 = vector.shape_cast %16 : vector<8x4xf32> to vector<1x8x4xf32>
    %25 = vector.shape_cast %17 : vector<8x4xf32> to vector<1x8x4xf32>
    %26 = vector.shape_cast %18 : vector<8x4xf32> to vector<1x8x4xf32>
    %27 = vector.shape_cast %19 : vector<8x4xf32> to vector<1x8x4xf32>
    %28 = vector.shape_cast %20 : vector<8x4xf32> to vector<1x8x4xf32>
    %29 = tpu.concatenate %21, %22, %23, %24, %25, %26, %27, %28 in 0 : vector<1x8x4xf32>, vector<1x8x4xf32>, vector<1x8x4xf32>, vector<1x8x4xf32>, vector<1x8x4xf32>, vector<1x8x4xf32>, vector<1x8x4xf32>, vector<1x8x4xf32> -> vector<8x8x4xf32>
    %30 = vector.extract_strided_slice %10 {offsets = [0, 0], sizes = [8, 4], strides = [1, 1]} : vector<8x32xf32> to vector<8x4xf32>
    %31 = vector.extract_strided_slice %10 {offsets = [0, 4], sizes = [8, 4], strides = [1, 1]} : vector<8x32xf32> to vector<8x4xf32>
    %32 = vector.extract_strided_slice %10 {offsets = [0, 8], sizes = [8, 4], strides = [1, 1]} : vector<8x32xf32> to vector<8x4xf32>
    %33 = vector.extract_strided_slice %10 {offsets = [0, 12], sizes = [8, 4], strides = [1, 1]} : vector<8x32xf32> to vector<8x4xf32>
    %34 = vector.extract_strided_slice %10 {offsets = [0, 16], sizes = [8, 4], strides = [1, 1]} : vector<8x32xf32> to vector<8x4xf32>
    %35 = vector.extract_strided_slice %10 {offsets = [0, 20], sizes = [8, 4], strides = [1, 1]} : vector<8x32xf32> to vector<8x4xf32>
    %36 = vector.extract_strided_slice %10 {offsets = [0, 24], sizes = [8, 4], strides = [1, 1]} : vector<8x32xf32> to vector<8x4xf32>
    %37 = vector.extract_strided_slice %10 {offsets = [0, 28], sizes = [8, 4], strides = [1, 1]} : vector<8x32xf32> to vector<8x4xf32>
    %38 = vector.shape_cast %30 : vector<8x4xf32> to vector<1x8x4xf32>
    %39 = vector.shape_cast %31 : vector<8x4xf32> to vector<1x8x4xf32>
    %40 = vector.shape_cast %32 : vector<8x4xf32> to vector<1x8x4xf32>
    %41 = vector.shape_cast %33 : vector<8x4xf32> to vector<1x8x4xf32>
    %42 = vector.shape_cast %34 : vector<8x4xf32> to vector<1x8x4xf32>
    %43 = vector.shape_cast %35 : vector<8x4xf32> to vector<1x8x4xf32>
    %44 = vector.shape_cast %36 : vector<8x4xf32> to vector<1x8x4xf32>
    %45 = vector.shape_cast %37 : vector<8x4xf32> to vector<1x8x4xf32>
    %46 = tpu.concatenate %38, %39, %40, %41, %42, %43, %44, %45 in 0 : vector<1x8x4xf32>, vector<1x8x4xf32>, vector<1x8x4xf32>, vector<1x8x4xf32>, vector<1x8x4xf32>, vector<1x8x4xf32>, vector<1x8x4xf32>, vector<1x8x4xf32> -> vector<8x8x4xf32>
    %47 = vector.extract_strided_slice %12 {offsets = [0, 0], sizes = [8, 4], strides = [1, 1]} : vector<8x32xf32> to vector<8x4xf32>
    %48 = vector.extract_strided_slice %12 {offsets = [0, 4], sizes = [8, 4], strides = [1, 1]} : vector<8x32xf32> to vector<8x4xf32>
    %49 = vector.extract_strided_slice %12 {offsets = [0, 8], sizes = [8, 4], strides = [1, 1]} : vector<8x32xf32> to vector<8x4xf32>
    %50 = vector.extract_strided_slice %12 {offsets = [0, 12], sizes = [8, 4], strides = [1, 1]} : vector<8x32xf32> to vector<8x4xf32>
    %51 = vector.extract_strided_slice %12 {offsets = [0, 16], sizes = [8, 4], strides = [1, 1]} : vector<8x32xf32> to vector<8x4xf32>
    %52 = vector.extract_strided_slice %12 {offsets = [0, 20], sizes = [8, 4], strides = [1, 1]} : vector<8x32xf32> to vector<8x4xf32>
    %53 = vector.extract_strided_slice %12 {offsets = [0, 24], sizes = [8, 4], strides = [1, 1]} : vector<8x32xf32> to vector<8x4xf32>
    %54 = vector.extract_strided_slice %12 {offsets = [0, 28], sizes = [8, 4], strides = [1, 1]} : vector<8x32xf32> to vector<8x4xf32>
    %55 = vector.shape_cast %47 : vector<8x4xf32> to vector<1x8x4xf32>
    %56 = vector.shape_cast %48 : vector<8x4xf32> to vector<1x8x4xf32>
    %57 = vector.shape_cast %49 : vector<8x4xf32> to vector<1x8x4xf32>
    %58 = vector.shape_cast %50 : vector<8x4xf32> to vector<1x8x4xf32>
    %59 = vector.shape_cast %51 : vector<8x4xf32> to vector<1x8x4xf32>
    %60 = vector.shape_cast %52 : vector<8x4xf32> to vector<1x8x4xf32>
    %61 = vector.shape_cast %53 : vector<8x4xf32> to vector<1x8x4xf32>
    %62 = vector.shape_cast %54 : vector<8x4xf32> to vector<1x8x4xf32>
    %63 = tpu.concatenate %55, %56, %57, %58, %59, %60, %61, %62 in 0 : vector<1x8x4xf32>, vector<1x8x4xf32>, vector<1x8x4xf32>, vector<1x8x4xf32>, vector<1x8x4xf32>, vector<1x8x4xf32>, vector<1x8x4xf32>, vector<1x8x4xf32> -> vector<8x8x4xf32>
    "tpu.trace_start"() <{level = 10 : i32, message = "hqd,hkd->hqk"}> : () -> ()
    %cst_9 = arith.constant dense<0.000000e+00> : vector<8x8x8xf32>
    %64 = tpu.matmul %29, %46, %cst_9 {dimension_numbers = #tpu.dot_dimension_numbers<[2], [2], [1], [1], [0, 0, 0, 1, 1, 1], [0], [0]>} : vector<8x8x4xf32>, vector<8x8x4xf32>, vector<8x8x8xf32> -> vector<8x8x8xf32>
    "tpu.trace_stop"() : () -> ()
    %cst_10 = arith.constant dense<0xFF800000> : vector<8x8xf32>
    %65 = vector.multi_reduction <maximumf>, %64, %cst_10 [2] : vector<8x8x8xf32> to vector<8x8xf32>
    %66 = vector.shape_cast %65 : vector<8x8xf32> to vector<8x8x1xf32>
    %67 = vector.broadcast %66 : vector<8x8x1xf32> to vector<8x8x8xf32>
    %68 = arith.subf %64, %67 : vector<8x8x8xf32>
    %69 = math.exp %68 : vector<8x8x8xf32>
    %cst_11 = arith.constant dense<0.000000e+00> : vector<8x8xf32>
    %70 = vector.multi_reduction <add>, %69, %cst_11 [2] : vector<8x8x8xf32> to vector<8x8xf32>
    %71 = vector.shape_cast %70 : vector<8x8xf32> to vector<8x8x1xf32>
    %72 = vector.broadcast %71 : vector<8x8x1xf32> to vector<8x8x8xf32>
    %73 = arith.divf %69, %72 : vector<8x8x8xf32>
    "tpu.trace_start"() <{level = 10 : i32, message = "hqk,hkd->hqd"}> : () -> ()
    %cst_12 = arith.constant dense<0.000000e+00> : vector<8x8x4xf32>
    %74 = tpu.matmul %73, %63, %cst_12 {dimension_numbers = #tpu.dot_dimension_numbers<[2], [1], [1], [2], [0, 0, 0, 1, 1, 2], [0], [0]>} : vector<8x8x8xf32>, vector<8x8x4xf32>, vector<8x8x4xf32> -> vector<8x8x4xf32>
    "tpu.trace_stop"() : () -> ()
    %75 = vector.extract_strided_slice %74 {offsets = [0, 0, 0], sizes = [1, 8, 4], strides = [1, 1, 1]} : vector<8x8x4xf32> to vector<1x8x4xf32>
    %76 = vector.shape_cast %75 : vector<1x8x4xf32> to vector<8x4xf32>
    %77 = vector.extract_strided_slice %74 {offsets = [1, 0, 0], sizes = [1, 8, 4], strides = [1, 1, 1]} : vector<8x8x4xf32> to vector<1x8x4xf32>
    %78 = vector.shape_cast %77 : vector<1x8x4xf32> to vector<8x4xf32>
    %79 = vector.extract_strided_slice %74 {offsets = [2, 0, 0], sizes = [1, 8, 4], strides = [1, 1, 1]} : vector<8x8x4xf32> to vector<1x8x4xf32>
    %80 = vector.shape_cast %79 : vector<1x8x4xf32> to vector<8x4xf32>
    %81 = vector.extract_strided_slice %74 {offsets = [3, 0, 0], sizes = [1, 8, 4], strides = [1, 1, 1]} : vector<8x8x4xf32> to vector<1x8x4xf32>
    %82 = vector.shape_cast %81 : vector<1x8x4xf32> to vector<8x4xf32>
    %83 = vector.extract_strided_slice %74 {offsets = [4, 0, 0], sizes = [1, 8, 4], strides = [1, 1, 1]} : vector<8x8x4xf32> to vector<1x8x4xf32>
    %84 = vector.shape_cast %83 : vector<1x8x4xf32> to vector<8x4xf32>
    %85 = vector.extract_strided_slice %74 {offsets = [5, 0, 0], sizes = [1, 8, 4], strides = [1, 1, 1]} : vector<8x8x4xf32> to vector<1x8x4xf32>
    %86 = vector.shape_cast %85 : vector<1x8x4xf32> to vector<8x4xf32>
    %87 = vector.extract_strided_slice %74 {offsets = [6, 0, 0], sizes = [1, 8, 4], strides = [1, 1, 1]} : vector<8x8x4xf32> to vector<1x8x4xf32>
    %88 = vector.shape_cast %87 : vector<1x8x4xf32> to vector<8x4xf32>
    %89 = vector.extract_strided_slice %74 {offsets = [7, 0, 0], sizes = [1, 8, 4], strides = [1, 1, 1]} : vector<8x8x4xf32> to vector<1x8x4xf32>
    %90 = vector.shape_cast %89 : vector<1x8x4xf32> to vector<8x4xf32>
    %91 = tpu.concatenate %76, %78, %80, %82, %84, %86, %88, %90 in 1 : vector<8x4xf32>, vector<8x4xf32>, vector<8x4xf32>, vector<8x4xf32>, vector<8x4xf32>, vector<8x4xf32>, vector<8x4xf32>, vector<8x4xf32> -> vector<8x32xf32>
    %c0_13 = arith.constant 0 : index
    %c0_14 = arith.constant 0 : index
    %92 = vector.load %arg4[%c0_13, %c0_14] : memref<32x32xf32, #tpu.memory_space<vmem>>, vector<32x32xf32>
    %cst_15 = arith.constant dense<0.000000e+00> : vector<8x32xf32>
    %93 = tpu.matmul %91, %92, %cst_15 {dimension_numbers = #tpu.dot_dimension_numbers<[1], [0], [0], [1], [0, 0, 1, 1], [], []>} : vector<8x32xf32>, vector<32x32xf32>, vector<8x32xf32> -> vector<8x32xf32>
    %c0_16 = arith.constant 0 : index
    %c0_17 = arith.constant 0 : index
    %94 = vector.load %arg5[%c0_16, %c0_17] : memref<1x32xf32, #tpu.memory_space<vmem>>, vector<1x32xf32>
    %95 = vector.broadcast %94 : vector<1x32xf32> to vector<8x32xf32>
    %96 = arith.addf %93, %95 : vector<8x32xf32>
    %c0_18 = arith.constant 0 : index
    %c0_19 = arith.constant 0 : index
    %c0_20 = arith.constant 0 : index
    %97 = vector.load %arg6[%c0_18, %c0_19, %c0_20] : memref<1x8x32xf32, #tpu.memory_space<vmem>>, vector<1x8x32xf32>
    %98 = vector.shape_cast %97 : vector<1x8x32xf32> to vector<8x32xf32>
    %99 = vector.shape_cast %96 : vector<8x32xf32> to vector<1x8x32xf32>
    tpu.vector_store %arg6[%c0_18, %c0_19, %c0_20], %99 {strides = array<i32>} : memref<1x8x32xf32, #tpu.memory_space<vmem>>, vector<1x8x32xf32>,
    return
  }
  func.func @transform_0(%arg0: i32) -> (i32, i32, i32, i32) {
    %c0_i32 = arith.constant 0 : i32
    %c0_i32_0 = arith.constant 0 : i32
    %c0_i32_1 = arith.constant 0 : i32
    %c0_i32_2 = arith.constant 0 : i32
    return %arg0, %c0_i32, %c0_i32_0, %c0_i32_1 : i32, i32, i32, i32
  }
  func.func @transform_1(%arg0: i32) -> (i32, i32, i32) {
    %c0_i32 = arith.constant 0 : i32
    %c0_i32_0 = arith.constant 0 : i32
    %c0_i32_1 = arith.constant 0 : i32
    %c0_i32_2 = arith.constant 0 : i32
    return %c0_i32, %c0_i32_0, %c0_i32_1 : i32, i32, i32
  }
  func.func @transform_2(%arg0: i32) -> (i32, i32, i32) {
    %c0_i32 = arith.constant 0 : i32
    %c0_i32_0 = arith.constant 0 : i32
    %c0_i32_1 = arith.constant 0 : i32
    %c0_i32_2 = arith.constant 0 : i32
    return %c0_i32, %c0_i32_0, %c0_i32_1 : i32, i32, i32
  }
  func.func @transform_3(%arg0: i32) -> (i32, i32) {
    %c0_i32 = arith.constant 0 : i32
    %c0_i32_0 = arith.constant 0 : i32
    %c0_i32_1 = arith.constant 0 : i32
    return %c0_i32, %c0_i32_0 : i32, i32
  }
  func.func @transform_4(%arg0: i32) -> (i32, i32) {
    %c0_i32 = arith.constant 0 : i32
    %c0_i32_0 = arith.constant 0 : i32
    %c0_i32_1 = arith.constant 0 : i32
    return %c0_i32, %c0_i32_0 : i32, i32
  }
  func.func @transform_5(%arg0: i32) -> (i32, i32, i32) {
    %c0_i32 = arith.constant 0 : i32
    %c0_i32_0 = arith.constant 0 : i32
    %c0_i32_1 = arith.constant 0 : i32
    return %arg0, %c0_i32, %c0_i32_0 : i32, i32, i32
  }
}

</mosaic_0001>

<bundles_post_ra>
// kernel: tpu_custom_call.1
= control target key start
LH: loop header
LB: loop body
LE: loop exit
PB: predicated region body
PF: predicated region fallthrough
CT: control target
= control target key end

     0   :  { %10 = vsyncpa [#allocation3], 0  ;;  %s2436_s0 = inlined_call_operand.hbm [shape: f32[1,3,8,32], index: 0, kind: input, shape index: {}]   ;;  %s2437_s1 = inlined_call_operand.hbm [shape: f32[3,32,32], index: 1, kind: input, shape index: {}]   ;;  %s2438_s2 = inlined_call_operand.vmem [shape: f32[3,1,32], index: 2, kind: input, shape index: {}]   ;;  %s2439_s3 = inlined_call_operand.hbm [shape: f32[32,32], index: 3, kind: input, shape index: {}]   ;;  %s2440_s4 = inlined_call_operand.vmem [shape: f32[1,32], index: 4, kind: input, shape index: {}]   ;;  %s2441_s5 = inlined_call_operand.hbm [shape: f32[1,8,32], index: 5, kind: output, shape index: {}]  }
   0x1   :  { %11 = vsyncpa [#allocation6], 0 }
   0x2   :  { %12 = vsyncpa [#allocation4], 0  ;;  %s2157_s18 = smov [#allocation5]   ;;  %s2158_s20 = smov [#allocation2]  }
   0x3   :  { %s30_s19 = sshll.u32 %s2157_s18, 4  ;;  %s18_s21 = sshll.u32 %s2158_s20, 4  ;;  %s31_s19 = int_to_ptr.vmem [resolvable:$true] %s30_s19  ;;  %s2209_s21 = int_to_ptr.vmem [resolvable:$true] %s18_s21 }
   0x4   :  { %s2063_s24 = scalar_lea.hbm %s2437_s1, 1536 }
   0x5   :  { %p2064_p0 = scmp.ne.s32.totalorder %s2437_s1, %s2063_s24  ;;  %p2067_p1 = scmp.lt.u32.totalorder %s2063_s24, %s2437_s1 }
   0x7   :  { %p2069_p2 = pnand %p2067_p1, %p2064_p0 }
   0x9   :  { %2072 = shalt.err (!%p2069_p2)
}
   0xa   :  { %s2073_s29 = scalar_lea.vmem %s31_s19, 1536  ;;  %p2078_p4 = scmp.lt.s32.totalorder %s31_s19, %s31_s19 }
   0xb   :  { %p2074_p3 = scmp.ne.s32.totalorder %s31_s19, %s2073_s29  ;;  %p2079_p5 = scmp.lt.s32.totalorder %s2073_s29, %s2073_s29 }
   0xd   :  { %p2080_p6 = por %p2079_p5, %p2078_p4 }
   0xf   :  { %p2081_p7 = pnand %p2080_p6, %p2074_p3 }
  0x11   :  { %2084 = shalt.err (!%p2081_p7)
}
  0x12   :  { %s2159_s30 = smov 128   ;;  %s2160_s6 = smov 8  }
  0x13   :  { %36 = dma.hbm_to_vmem [thread:$0]  %s2437_s1, 1536, %s31_s19, [#allocation6], %s2159_s30, %s2159_s30, %s2160_s6  }
  0x14   :  { %s2085_s11 = scalar_lea.hbm %s2436_s0, 384 }
  0x15   :  { %p2086_p8 = scmp.ne.s32.totalorder %s2436_s0, %s2085_s11  ;;  %p2089_p9 = scmp.lt.u32.totalorder %s2085_s11, %s2436_s0 }
  0x17   :  { %p2091_p10 = pnand %p2089_p9, %p2086_p8 }
  0x19   :  { %2094 = shalt.err (!%p2091_p10)
}
  0x1a   :  { %s2095_s16 = scalar_lea.vmem %s2209_s21, 384  ;;  %p2100_p12 = scmp.lt.s32.totalorder %s2209_s21, %s2209_s21 }
  0x1b   :  { %p2096_p11 = scmp.ne.s32.totalorder %s2209_s21, %s2095_s16  ;;  %p2101_p13 = scmp.lt.s32.totalorder %s2095_s16, %s2095_s16 }
  0x1d   :  { %p2102_p0 = por %p2101_p13, %p2100_p12 }
  0x1f   :  { %p2103_p1 = pnand %p2102_p0, %p2096_p11 }
  0x21   :  { %2106 = shalt.err (!%p2103_p1)
}
  0x22   :  { %24 = dma.hbm_to_vmem [thread:$0]  %s2436_s0, 384, %s2209_s21, [#allocation3], %s2159_s30, %s2159_s30, %s2160_s6  }
  0x23   :  { %s2161_s18 = smov [#allocation7]   ;;  %s2107_s23 = scalar_lea.hbm %s2439_s3, 512 }
  0x24   :  { %s44_s19 = sshll.u32 %s2161_s18, 4  ;;  %p2108_p2 = scmp.ne.s32.totalorder %s2439_s3, %s2107_s23  ;;  %s45_s19 = int_to_ptr.vmem [resolvable:$true] %s44_s19 }
  0x25   :  { %p2111_p3 = scmp.lt.u32.totalorder %s2107_s23, %s2439_s3 }
  0x27   :  { %p2113_p4 = pnand %p2111_p3, %p2108_p2 }
  0x29   :  { %2116 = shalt.err (!%p2113_p4)
}
  0x2a   :  { %s2117_s28 = scalar_lea.vmem %s45_s19, 512  ;;  %p2122_p6 = scmp.lt.s32.totalorder %s45_s19, %s45_s19 }
  0x2b   :  { %p2118_p5 = scmp.ne.s32.totalorder %s45_s19, %s2117_s28  ;;  %p2123_p7 = scmp.lt.s32.totalorder %s2117_s28, %s2117_s28 }
  0x2d   :  { %p2124_p8 = por %p2123_p7, %p2122_p6 }
  0x2f   :  { %p2125_p9 = pnand %p2124_p8, %p2118_p5 }
  0x31   :  { %2128 = shalt.err (!%p2125_p9)
}
  0x32   :  { %50 = dma.hbm_to_vmem [thread:$0]  %s2439_s3, 512, %s45_s19, [#allocation6], %s2159_s30, %s2159_s30, %s2160_s6  }
  0x33   :  { %2151 = dma.done.wait [#allocation3], 384  }
  0x34   :  { %2152 = vsyncadd [#allocation3], 4294966912 }
  0x35   :  { %2153 = dma.done.wait [#allocation6], 2048  }
  0x36   :  { %2154 = vsyncadd [#allocation6], 4294965248  ;;  %v2162_v0 = vmov 0.0|0.0   ;;  %vm2163_vm0 = vmmov 0   ;;  %v2164_v1 = vmov 0.0   ;;  %v69_v2 = vld [vmem:[#allocation5 + $0x20] sm:$0xff] }
  0x37   :  { %1991 = vmatprep.subr.bf16.mxu1 %v2162_v0  ;;  %1985 = vmatprep.subr.bf16.mxu0 %v2162_v0  ;;  %v70_v3 = vld [vmem:[#allocation5 + $0x28] sm:$0xff]  ;;  %v65_v4 = vld [vmem:[#allocation5] sm:$0xff]  ;;  %v71_v7 = vld [vmem:[#allocation5 + $0x30] sm:$0xff]  ;;  %vm98_vm1 = vcmask 261120   ;;  %vm370_vm2 = vcmask 31744   ;;  %s2165_s8 = smov 120  }
  0x38   :  { %1880 = vmatprep.mubr.msk.f32.mxu1 %vm2163_vm0, %v2164_v1  ;;  %1869 = vmatprep.mubr.msk.f32.mxu0 %vm2163_vm0, %v2164_v1  ;;  %v1992_v5 = vpack.c.bf16 %v70_v3, %v69_v2  ;;  %v66_v6 = vld [vmem:[#allocation5 + $0x8] sm:$0xff]  ;;  %v72_v8 = vld [vmem:[#allocation5 + $0x38] sm:$0xff]  ;;  %v67_v10 = vld [vmem:[#allocation5 + $0x10] sm:$0xff]  ;;  %s2166_s9 = smov 124   ;;  %s2167_s10 = smov 116   ;;  %vm963_vm3 = vcmask 64512  }
  0x39   :  { %v1986_v9 = vpack.c.bf16 %v66_v6, %v65_v4  ;;  %v68_v11 = vld [vmem:[#allocation5 + $0x18] sm:$0xff]  ;;  %v1995_v12 = vpack.c.bf16 %v72_v8, %v71_v7  ;;  %v63_v14 = vld [vmem:[#allocation2 + $0x8] sm:$0xff]  ;;  %v62_v15 = vld [vmem:[#allocation2] sm:$0xff]  ;;  %s2168_s11 = smov 108   ;;  %s2169_s12 = smov 112   ;;  %vm1666_vm4 = vcmask 97280  }
  0x3a   :  { %1993 = vmatpush3.bf16.msra.mxu1 %v1992_v5  ;;  %v1989_v13 = vpack.c.bf16 %v68_v11, %v67_v10  ;;  %v73_v16 = vld [vmem:[#allocation5 + $0x40] sm:$0xff]  ;;  %v74_v17 = vld [vmem:[#allocation5 + $0x48] sm:$0xff]  ;;  %v75_v19 = vld [vmem:[#allocation5 + $0x50] sm:$0xff]  ;;  %s2170_s13 = smov 100   ;;  %s2171_s14 = smov 104   ;;  %vm1668_vm5 = vcmask 130048  }
  0x3b   :  { %1987 = vmatpush3.bf16.msra.mxu0 %v1986_v9  ;;  %1994 = vmatprep.subr.bf16.mxu1 %v2162_v0  ;;  %v1998_v18 = vpack.c.bf16 %v74_v17, %v73_v16  ;;  %v76_v20 = vld [vmem:[#allocation5 + $0x58] sm:$0xff]  ;;  %v1778_v22 = vld [vmem:[%s2438_s2 + $0x1] ss:$0 sm:$0xff]  ;;  %v1777_v24 = vld [vmem:[%s2438_s2] ss:$0 sm:$0xff]  ;;  %s2173_s1 = smov 12  }
  0x3c   :  { %1988 = vmatprep.subr.bf16.mxu0 %v2162_v0  ;;  %v2001_v21 = vpack.c.bf16 %v76_v20, %v75_v19  ;;  %v64_v25 = vld [vmem:[#allocation2 + $0x10] sm:$0xff]  ;;  %v1779_v45 = vld [vmem:[%s2438_s2 + $0x2] ss:$0 sm:$0xff]  ;;  %s2172_s2 = smov 4   ;;  %s2174_s17 = smov 20   ;;  %vm1670_vm6 = vcmask 162816  }
  0x3d   :  { %s2175_s18 = smov 28   ;;  %s2176_s19 = smov 16   ;;  %vm1672_vm7 = vcmask 195584   ;;  %vm1674_vm8 = vcmask 228352  }
  0x3e   :  { %1996 = vmatpush3.bf16.msra.mxu1 %v1995_v12  ;;  %s2177_s20 = smov 24   ;;  %s2178_s23 = smov [#allocation8]  }
  0x3f   :  { %1990 = vmatpush3.bf16.msra.mxu0 %v1989_v13  ;;  %1894 = vmatprep.subr.mxu1 %v2164_v1  ;;  %s1767_s24 = sshll.u32 %s2178_s23, 4  ;;  %s1768_s24 = int_to_ptr.vmem [resolvable:$true] %s1767_s24 }
  0x40   :  { %1997 = vmatprep.subr.bf16.mxu0 %v2162_v0  ;;  %s2129_s25 = scalar_lea.vmem %s1768_s24, 128  ;;  %p2134_p11 = scmp.lt.s32.totalorder %s1768_s24, %s1768_s24 }
  0x41   :  { %1881 = vmatmul.mubr.msk.f32.vlgmr.msra.gmra.mrb[0].mxu1 %vm98_vm1, %v63_v14  ;;  %p2130_p10 = scmp.ne.s32.totalorder %s1768_s24, %s2129_s25  ;;  %p2135_p12 = scmp.lt.s32.totalorder %s2129_s25, %s2129_s25 }
  0x42   :  { %1870 = vmatmul.mubr.msk.f32.vlgmr.msra.gmra.mrb[0].mxu0 %vm98_vm1, %v62_v15  ;;  %1896 = vmatprep.mubr.msk.f32.mxu1 %vm2163_vm0, %v2164_v1 }
  0x43   :  { %1891 = vmatprep.mubr.msk.f32.mxu0 %vm2163_vm0, %v2164_v1  ;;  %1999 = vmatpush3.bf16.msra.mxu0 %v1998_v18  ;;  %p2136_p13 = por %p2135_p12, %p2134_p11 }
  0x44   :  { %2000 = vmatprep.subr.bf16.mxu0 %v2162_v0 }
  0x45   :  { %p2137_p0 = pnand %p2136_p13, %p2130_p10 }
  0x47   :  { %2002 = vmatpush3.bf16.msra.mxu0 %v2001_v21 }
  0x48   :  { %1914 = vmatprep.subr.mxu0 %v2164_v1 }
  0x4a   :  { %1892 = vmatmul.mubr.msk.f32.vlgmr.msra.gmra.mrb[2].mxu0 %vm98_vm1, %v64_v25 }
  0x4b   :  { %1916 = vmatprep.mubr.msk.f32.mxu0 %vm2163_vm0, %v2164_v1 }
 0x114   :  { %v241_v23 = vpop.f32.mrb[0].mxu1 }
 0x115   :  { %v242_v26 = vadd.f32 %v1778_v22, %v241_v23  ;;  %v1882_v27 = vpop.f32.mrb[1].mxu1  ;;  %v168_v28 = vpop.f32.mrb[0].mxu0 }
 0x116   :  { %v1871_v29 = vpop.f32.mrb[1].mxu0  ;;  %v169_v30 = vadd.f32 %v1777_v24, %v168_v28 }
 0x117   :  { %336 = vrot.lane.b32.xlu1 %v242_v26, %s2165_s8  ;;  %334 = vrot.lane.b32.xlu0 %v242_v26, %s2166_s9 }
 0x118   :  { %1895 = vmatpush3.xpose.msk.msra.mxu1 %vm370_vm2, %v242_v26 }
 0x119   :  { %1899 = vmatprep.subr.mxu1 %v2164_v1 }
 0x11b   :  { %1897 = vmatmul.mubr.msk.f32.vlgmr.msra.gmra.mrb[2].mxu1 %vm370_vm2, %v169_v30  ;;  %321 = vrot.lane.b32.xlu1 %v169_v30, %s2165_s8 }
 0x11c   :  { %319 = vrot.lane.b32.xlu0 %v169_v30, %s2166_s9  ;;  %1901 = vmatprep.mubr.msk.f32.mxu1 %vm2163_vm0, %v2164_v1 }
 0x11d   :  { %v314_v46 = vpop.f32.mrb[2].mxu0 }
 0x11e   :  { %v2345_v47 = vadd.f32 %v1779_v45, %v314_v46  ;;  %v1893_v48 = vpop.f32.mrb[3].mxu0 }
 0x11f   :  { %323 = vrot.lane.b32.xlu1 %v169_v30, %s2167_s10 }
 0x120   :  { %338 = vrot.lane.b32.xlu0 %v242_v26, %s2167_s10 }
 0x123   :  { %342 = vrot.lane.b32.xlu1 %v242_v26, %s2168_s11 }
 0x124   :  { %340 = vrot.lane.b32.xlu0 %v242_v26, %s2169_s12 }
 0x127   :  { %327 = vrot.lane.b32.xlu1 %v169_v30, %s2168_s11 }
 0x128   :  { %325 = vrot.lane.b32.xlu0 %v169_v30, %s2169_s12 }
 0x12b   :  { %346 = vrot.lane.b32.xlu1 %v242_v26, %s2170_s13 }
 0x12c   :  { %344 = vrot.lane.b32.xlu0 %v242_v26, %s2171_s14 }
 0x12f   :  { %331 = vrot.lane.b32.xlu1 %v169_v30, %s2170_s13 }
 0x130   :  { %329 = vrot.lane.b32.xlu0 %v169_v30, %s2171_s14 }
 0x189   :  { %v337_v31 = vpop.permute.xlu1 %336  ;;  %v335_v32 = vpop.permute.xlu0 %334 }
 0x18a   :  { %1900 = vmatpush3.xpose.msk.msra.mxu1 %vm370_vm2, %v335_v32 }
 0x18b   :  { %1904 = vmatprep.subr.mxu1 %v2164_v1 }
 0x18d   :  { %v322_v33 = vpop.permute.xlu1 %321 }
 0x18e   :  { %v320_v34 = vpop.permute.xlu0 %319 }
 0x18f   :  { %1902 = vmatmul.mubr.msk.f32.vlgmr.msra.gmra.mrb[4].mxu1 %vm370_vm2, %v320_v34 }
 0x190   :  { %1905 = vmatpush3.xpose.msk.msra.mxu1 %vm370_vm2, %v337_v31  ;;  %1906 = vmatprep.mubr.msk.f32.mxu1 %vm2163_vm0, %v2164_v1 }
 0x191   :  { %v324_v35 = vpop.permute.xlu1 %323  ;;  %1909 = vmatprep.subr.mxu1 %v2164_v1 }
 0x192   :  { %v339_v36 = vpop.permute.xlu0 %338 }
 0x193   :  { %1907 = vmatmul.mubr.msk.f32.vlgmr.msra.gmra.mrb[6].mxu1 %vm370_vm2, %v322_v33 }
 0x194   :  { %1910 = vmatpush3.xpose.msk.msra.mxu1 %vm370_vm2, %v339_v36  ;;  %1911 = vmatprep.mubr.msk.f32.mxu1 %vm2163_vm0, %v2164_v1 }
 0x195   :  { %v343_v37 = vpop.permute.xlu1 %342  ;;  %1919 = vmatprep.subr.mxu1 %v2164_v1 }
 0x196   :  { %v341_v38 = vpop.permute.xlu0 %340 }
 0x197   :  { %1912 = vmatmul.mubr.msk.f32.vlgmr.msra.gmra.mrb[8].mxu1 %vm370_vm2, %v324_v35  ;;  %1915 = vmatpush3.xpose.msk.msra.mxu0 %vm370_vm2, %v341_v38 }
 0x198   :  { %1920 = vmatpush3.xpose.msk.msra.mxu1 %vm370_vm2, %v343_v37  ;;  %1921 = vmatprep.mubr.msk.f32.mxu1 %vm2163_vm0, %v2164_v1 }
 0x199   :  { %v328_v39 = vpop.permute.xlu1 %327  ;;  %1924 = vmatprep.subr.mxu0 %v2164_v1  ;;  %1929 = vmatprep.subr.mxu1 %v2164_v1 }
 0x19a   :  { %v326_v40 = vpop.permute.xlu0 %325 }
 0x19b   :  { %1917 = vmatmul.mubr.msk.f32.vlgmr.msra.gmra.mrb[4].mxu0 %vm370_vm2, %v326_v40  ;;  %1922 = vmatmul.mubr.msk.f32.vlgmr.msra.gmra.mrb[10].mxu1 %vm370_vm2, %v328_v39 }
 0x19c   :  { %1926 = vmatprep.mubr.msk.f32.mxu0 %vm2163_vm0, %v2164_v1  ;;  %1931 = vmatprep.mubr.msk.f32.mxu1 %vm2163_vm0, %v2164_v1 }
 0x19d   :  { %v347_v41 = vpop.permute.xlu1 %346 }
 0x19e   :  { %v345_v42 = vpop.permute.xlu0 %344  ;;  %1930 = vmatpush3.xpose.msk.msra.mxu1 %vm370_vm2, %v347_v41 }
 0x19f   :  { %1925 = vmatpush3.xpose.msk.msra.mxu0 %vm370_vm2, %v345_v42  ;;  %1939 = vmatprep.subr.mxu1 %v2164_v1 }
 0x1a0   :  { %1934 = vmatprep.subr.mxu0 %v2164_v1 }
 0x1a1   :  { %v332_v43 = vpop.permute.xlu1 %331 }
 0x1a2   :  { %v330_v44 = vpop.permute.xlu0 %329  ;;  %1932 = vmatmul.mubr.msk.f32.vlgmr.msra.gmra.mrb[12].mxu1 %vm370_vm2, %v332_v43 }
 0x1a3   :  { %1927 = vmatmul.mubr.msk.f32.vlgmr.msra.gmra.mrb[6].mxu0 %vm370_vm2, %v330_v44  ;;  %1941 = vmatprep.mubr.msk.f32.mxu1 %vm2163_vm0, %v2164_v1 }
 0x1a4   :  { %1936 = vmatprep.mubr.msk.f32.mxu0 %vm2163_vm0, %v2164_v1  ;;  %1935 = vmatpush3.msra.mxu0 %v2345_v47 }
 0x1a5   :  { %1944 = vmatprep.subr.mxu0 %v2164_v1 }
 0x1ee   :  { %v441_v49 = vpop.f32.mrb[2].mxu1 }
 0x1ef   :  { %v1898_v50 = vpop.f32.mrb[3].mxu1  ;;  %v964_v51 = vsel %vm963_vm3, %v441_v49, -inf }
 0x1f0   :  { %965 = vmax.xlane.f32.xlu0 %v964_v51 }
 0x262   :  { %v515_v52 = vpop.f32.mrb[4].mxu1 }
 0x263   :  { %v1903_v53 = vpop.f32.mrb[5].mxu1  ;;  %v967_v54 = vsel %vm963_vm3, %v515_v52, -inf }
 0x264   :  { %968 = vmax.xlane.f32.xlu1 %v967_v54 }
 0x266   :  { %v589_v55 = vpop.f32.mrb[6].mxu1 }
 0x267   :  { %v1908_v56 = vpop.f32.mrb[7].mxu1  ;;  %v970_v57 = vsel %vm963_vm3, %v589_v55, -inf }
 0x268   :  { %971 = vmax.xlane.f32.xlu0 %v970_v57 }
 0x26a   :  { %v663_v58 = vpop.f32.mrb[8].mxu1 }
 0x26b   :  { %v1913_v59 = vpop.f32.mrb[9].mxu1  ;;  %v973_v60 = vsel %vm963_vm3, %v663_v58, -inf }
 0x26c   :  { %974 = vmax.xlane.f32.xlu0 %v973_v60 }
 0x26e   :  { %v737_v61 = vpop.f32.mrb[4].mxu0  ;;  %v811_v62 = vpop.f32.mrb[10].mxu1 }
 0x26f   :  { %v1918_v63 = vpop.f32.mrb[5].mxu0  ;;  %v1923_v2 = vpop.f32.mrb[11].mxu1  ;;  %v979_v3 = vsel %vm963_vm3, %v811_v62, -inf  ;;  %v976_v4 = vsel %vm963_vm3, %v737_v61, -inf }
 0x270   :  { %980 = vmax.xlane.f32.xlu0 %v979_v3  ;;  %977 = vmax.xlane.f32.xlu1 %v976_v4 }
 0x275   :  { %v959_v5 = vpop.f32.mrb[12].mxu1 }
 0x276   :  { %v885_v6 = vpop.f32.mrb[6].mxu0  ;;  %v1933_v7 = vpop.f32.mrb[13].mxu1  ;;  %v985_v8 = vsel %vm963_vm3, %v959_v5, -inf }
 0x277   :  { %v1928_v9 = vpop.f32.mrb[7].mxu0  ;;  %986 = vmax.xlane.f32.xlu0 %v985_v8  ;;  %v982_v10 = vsel %vm963_vm3, %v885_v6, -inf }
 0x278   :  { %983 = vmax.xlane.f32.xlu1 %v982_v10 }
 0x27d   :  { %v966_v11 = vpop.xlane.xlu0 %965 }
 0x27e   :  { %v988_v12 = vsub.f32 %v441_v49, %v966_v11 }
 0x280   :  { %v996_v13 = vmul.f32 1.442695, %v988_v12 }
 0x282   :  { %2031 = vpow2.f32 %v996_v13 }
 0x289   :  { %349 = vrot.lane.b32.xlu1 %v2345_v47, %s2166_s9 }
 0x28c   :  { %v2032_v14 = vpop.eup %2031 }
 0x28d   :  { %355 = vrot.lane.b32.xlu1 %v2345_v47, %s2167_s10  ;;  %352 = vrot.lane.b32.xlu0 %v2345_v47, %s2165_s8  ;;  %v1012_v15 = vsel %vm963_vm3, %v2032_v14, 0.0 }
 0x291   :  { %358 = vrot.lane.b32.xlu1 %v2345_v47, %s2169_s12  ;;  %361 = vrot.lane.b32.xlu0 %v2345_v47, %s2168_s11 }
 0x2b5   :  { %1013 = vadd.xlane.f32.xlu1 %v1012_v15 }
 0x2f1   :  { %v969_v16 = vpop.xlane.xlu1 %968 }
 0x2f2   :  { %v989_v17 = vsub.f32 %v515_v52, %v969_v16 }
 0x2f4   :  { %v998_v18 = vmul.f32 1.442695, %v989_v17 }
 0x2f5   :  { %v972_v19 = vpop.xlane.xlu0 %971 }
 0x2f6   :  { %2033 = vpow2.f32 %v998_v18  ;;  %v990_v23 = vsub.f32 %v589_v55, %v972_v19 }
 0x2f8   :  { %v1000_v31 = vmul.f32 1.442695, %v990_v23 }
 0x2f9   :  { %v975_v20 = vpop.xlane.xlu0 %974 }
 0x2fa   :  { %v991_v21 = vsub.f32 %v663_v58, %v975_v20 }
 0x2fc   :  { %v1002_v22 = vmul.f32 1.442695, %v991_v21 }
 0x2fd   :  { %v981_v24 = vpop.xlane.xlu0 %980  ;;  %v978_v25 = vpop.xlane.xlu1 %977 }
 0x2fe   :  { %2035 = vpow2.f32 %v1002_v22  ;;  %v993_v26 = vsub.f32 %v811_v62, %v981_v24  ;;  %v992_v27 = vsub.f32 %v737_v61, %v978_v25  ;;  %v1676_v24 = vld [vmem:[#allocation7] sm:$0xff]  ;;  %v1677_v25 = vld [vmem:[#allocation7 + $0x8] sm:$0xff] }
 0x300   :  { %v2034_v28 = vpop.eup %2033  ;;  %v1006_v29 = vmul.f32 1.442695, %v993_v26  ;;  %v1004_v30 = vmul.f32 1.442695, %v992_v27  ;;  %v2004_v26 = vpack.c.bf16 %v1677_v25, %v1676_v24 }
 0x301   :  { %v1015_v32 = vsel %vm963_vm3, %v2034_v28, 0.0 }
 0x302   :  { %2037 = vpow2.f32 %v1006_v29  ;;  %1016 = vadd.xlane.f32.xlu0 %v1015_v32  ;;  %v1678_v29 = vld [vmem:[#allocation7 + $0x10] sm:$0xff] }
 0x303   :  { %2039 = vpow2.f32 %v1004_v30  ;;  %v1679_v30 = vld [vmem:[#allocation7 + $0x18] sm:$0xff] }
 0x304   :  { %v987_v33 = vpop.xlane.xlu0 %986  ;;  %2041 = vpow2.f32 %v1000_v31  ;;  %v2007_v31 = vpack.c.bf16 %v1679_v30, %v1678_v29 }
 0x305   :  { %v995_v34 = vsub.f32 %v959_v5, %v987_v33  ;;  %v984_v35 = vpop.xlane.xlu1 %983 }
 0x306   :  { %v994_v36 = vsub.f32 %v885_v6, %v984_v35 }
 0x307   :  { %v1010_v37 = vmul.f32 1.442695, %v995_v34 }
 0x308   :  { %v2036_v38 = vpop.eup %2035  ;;  %v1008_v39 = vmul.f32 1.442695, %v994_v36  ;;  %v353_v58 = vpop.permute.xlu0 %352 }
 0x309   :  { %2043 = vpow2.f32 %v1010_v37  ;;  %v350_v40 = vpop.permute.xlu1 %349  ;;  %v1021_v41 = vsel %vm963_vm3, %v2036_v38, 0.0 }
 0x30a   :  { %2045 = vpow2.f32 %v1008_v39  ;;  %1022 = vadd.xlane.f32.xlu0 %v1021_v41  ;;  %1940 = vmatpush3.msra.mxu1 %v350_v40 }
 0x30b   :  { %1949 = vmatprep.subr.mxu1 %v2164_v1 }
 0x30c   :  { %v2038_v42 = vpop.eup %2037  ;;  %v362_v59 = vpop.permute.xlu0 %361 }
 0x30d   :  { %v2371_v43 = vpop.eup %2039  ;;  %v1027_v44 = vsel %vm963_vm3, %v2038_v42, 0.0  ;;  %v356_v53 = vpop.permute.xlu1 %355 }
 0x30e   :  { %1028 = vadd.xlane.f32.xlu0 %v1027_v44  ;;  %v1024_v45 = vsel %vm963_vm3, %v2371_v43, 0.0  ;;  %v2042_v46 = vpop.eup %2041 }
 0x30f   :  { %1025 = vadd.xlane.f32.xlu1 %v1024_v45  ;;  %v1018_v48 = vsel %vm963_vm3, %v2042_v46, 0.0 }
 0x311   :  { %v359_v54 = vpop.permute.xlu1 %358 }
 0x313   :  { %v2044_v49 = vpop.eup %2043  ;;  %1019 = vadd.xlane.f32.xlu1 %v1018_v48 }
 0x314   :  { %v2377_v50 = vpop.eup %2045  ;;  %v1033_v51 = vsel %vm963_vm3, %v2044_v49, 0.0 }
 0x315   :  { %1034 = vadd.xlane.f32.xlu0 %v1033_v51  ;;  %v1030_v52 = vsel %vm963_vm3, %v2377_v50, 0.0 }
 0x317   :  { %1031 = vadd.xlane.f32.xlu1 %v1030_v52 }
 0x328   :  { %364 = vrot.lane.b32.xlu1 %v2345_v47, %s2171_s14 }
 0x32b   :  { %367 = vrot.lane.b32.xlu0 %v2345_v47, %s2170_s13 }
 0x342   :  { %v1014_v55 = vpop.xlane.xlu1 %1013 }
 0x343   :  { %2047 = vrcp.f32 %v1014_v55  ;;  %v1807_v55 = vld [vmem:[%s2440_s4] ss:$0 sm:$0xff] }
 0x34d   :  { %v2048_v56 = vpop.eup %2047 }
 0x34e   :  { %v1037_v57 = vmul.f32 %v2048_v56, %v2032_v14 }
 0x350   :  { %1937 = vmatmul.mubr.msk.f32.vlgmr.msra.gmra.mrb[8].mxu0 %vm963_vm3, %v1037_v57 }
 0x351   :  { %1945 = vmatpush3.msra.mxu0 %v353_v58  ;;  %1946 = vmatprep.mubr.msk.f32.mxu0 %vm2163_vm0, %v2164_v1 }
 0x352   :  { %1954 = vmatprep.subr.mxu0 %v2164_v1 }
 0x38f   :  { %v1017_v60 = vpop.xlane.xlu0 %1016 }
 0x390   :  { %2049 = vrcp.f32 %v1017_v60 }
 0x397   :  { %v1023_v61 = vpop.xlane.xlu0 %1022 }
 0x398   :  { %2051 = vrcp.f32 %v1023_v61 }
 0x39a   :  { %v2050_v47 = vpop.eup %2049 }
 0x39b   :  { %v1039_v62 = vmul.f32 %v2050_v47, %v2034_v28  ;;  %v1029_v63 = vpop.xlane.xlu0 %1028 }
 0x39c   :  { %2053 = vrcp.f32 %v1029_v63  ;;  %v1026_v2 = vpop.xlane.xlu1 %1025 }
 0x39d   :  { %1942 = vmatmul.mubr.msk.f32.vlgmr.msra.gmra.mrb[14].mxu1 %vm963_vm3, %v1039_v62 }
 0x39e   :  { %1950 = vmatpush3.msra.mxu1 %v356_v53  ;;  %1951 = vmatprep.mubr.msk.f32.mxu1 %vm2163_vm0, %v2164_v1 }
 0x39f   :  { %1959 = vmatprep.subr.mxu1 %v2164_v1 }
 0x3a0   :  { %v1020_v3 = vpop.xlane.xlu1 %1019 }
 0x3a1   :  { %2055 = vrcp.f32 %v1020_v3 }
 0x3a2   :  { %v2052_v4 = vpop.eup %2051  ;;  %2057 = vrcp.f32 %v1026_v2  ;;  %v1035_v5 = vpop.xlane.xlu0 %1034 }
 0x3a3   :  { %v1043_v6 = vmul.f32 %v2052_v4, %v2036_v38  ;;  %2059 = vrcp.f32 %v1035_v5 }
 0x3a4   :  { %v1032_v7 = vpop.xlane.xlu1 %1031 }
 0x3a5   :  { %1952 = vmatmul.mubr.msk.f32.vlgmr.msra.gmra.mrb[16].mxu1 %vm963_vm3, %v1043_v6  ;;  %2061 = vrcp.f32 %v1032_v7 }
 0x3a6   :  { %v2054_v8 = vpop.eup %2053  ;;  %1960 = vmatpush3.msra.mxu1 %v362_v59  ;;  %1961 = vmatprep.mubr.msk.f32.mxu1 %vm2163_vm0, %v2164_v1  ;;  %v368_v10 = vpop.permute.xlu0 %367 }
 0x3a7   :  { %v1047_v9 = vmul.f32 %v2054_v8, %v2038_v42  ;;  %1969 = vmatprep.subr.mxu1 %v2164_v1 }
 0x3a8   :  { %v365_v18 = vpop.permute.xlu1 %364 }
 0x3a9   :  { %1962 = vmatmul.mubr.msk.f32.vlgmr.msra.gmra.mrb[18].mxu1 %vm963_vm3, %v1047_v9 }
 0x3aa   :  { %1970 = vmatpush3.msra.mxu1 %v368_v10  ;;  %1971 = vmatprep.mubr.msk.f32.mxu1 %vm2163_vm0, %v2164_v1 }
 0x3ab   :  { %v2056_v11 = vpop.eup %2055 }
 0x3ac   :  { %v2058_v12 = vpop.eup %2057  ;;  %v1041_v13 = vmul.f32 %v2056_v11, %v2042_v46 }
 0x3ad   :  { %v2060_v14 = vpop.eup %2059  ;;  %v1045_v16 = vmul.f32 %v2058_v12, %v2371_v43 }
 0x3ae   :  { %v1051_v15 = vmul.f32 %v2060_v14, %v2044_v49  ;;  %1947 = vmatmul.mubr.msk.f32.vlgmr.msra.gmra.mrb[10].mxu0 %vm963_vm3, %v1041_v13 }
 0x3af   :  { %1955 = vmatpush3.msra.mxu0 %v359_v54  ;;  %1956 = vmatprep.mubr.msk.f32.mxu0 %vm2163_vm0, %v2164_v1  ;;  %v2062_v17 = vpop.eup %2061 }
 0x3b0   :  { %1964 = vmatprep.subr.mxu0 %v2164_v1  ;;  %1972 = vmatmul.mubr.msk.f32.vlgmr.msra.gmra.mrb[20].mxu1 %vm963_vm3, %v1051_v15  ;;  %v1049_v19 = vmul.f32 %v2062_v17, %v2377_v50 }
 0x3b2   :  { %1957 = vmatmul.mubr.msk.f32.vlgmr.msra.gmra.mrb[12].mxu0 %vm963_vm3, %v1045_v16 }
 0x3b3   :  { %1965 = vmatpush3.msra.mxu0 %v365_v18  ;;  %1966 = vmatprep.mubr.msk.f32.mxu0 %vm2163_vm0, %v2164_v1 }
 0x3b4   :  { %2003 = vmatprep.subr.bf16.mxu0 %v2162_v0 }
 0x3b6   :  { %1967 = vmatmul.mubr.msk.f32.vlgmr.msra.gmra.mrb[14].mxu0 %vm963_vm3, %v1049_v19 }
 0x3b7   :  { %1982 = vmatprep.mubr.msk.f32.mxu0 %vm2163_vm0, %v2164_v1  ;;  %2005 = vmatpush3.bf16.msra.mxu0 %v2004_v26 }
 0x3b8   :  { %2006 = vmatprep.subr.bf16.mxu0 %v2162_v0 }
 0x3bb   :  { %2008 = vmatpush3.bf16.msra.mxu0 %v2007_v31 }
 0x423   :  { %v1121_v20 = vpop.f32.mrb[8].mxu0 }
 0x424   :  { %v1938_v21 = vpop.f32.mrb[9].mxu0 }
 0x470   :  { %v1194_v22 = vpop.f32.mrb[14].mxu1 }
 0x471   :  { %1637 = vrot.lane.b32.xlu1 %v1194_v22, %s2172_s2  ;;  %v1943_v23 = vpop.f32.mrb[15].mxu1 }
 0x478   :  { %v1340_v27 = vpop.f32.mrb[16].mxu1 }
 0x479   :  { %1645 = vrot.lane.b32.xlu1 %v1340_v27, %s2173_s1  ;;  %v1953_v28 = vpop.f32.mrb[17].mxu1 }
 0x47c   :  { %v1486_v1 = vpop.f32.mrb[18].mxu1 }
 0x47d   :  { %1653 = vrot.lane.b32.xlu1 %v1486_v1, %s2174_s17  ;;  %v1963_v32 = vpop.f32.mrb[19].mxu1 }
 0x481   :  { %v1267_v33 = vpop.f32.mrb[10].mxu0 }
 0x482   :  { %1641 = vrot.lane.b32.xlu0 %v1267_v33, %s2160_s6  ;;  %v1948_v34 = vpop.f32.mrb[11].mxu0 }
 0x483   :  { %v1632_v35 = vpop.f32.mrb[20].mxu1 }
 0x484   :  { %1661 = vrot.lane.b32.xlu1 %v1632_v35, %s2175_s18  ;;  %v1973_v36 = vpop.f32.mrb[21].mxu1 }
 0x485   :  { %v1413_v37 = vpop.f32.mrb[12].mxu0 }
 0x486   :  { %1649 = vrot.lane.b32.xlu0 %v1413_v37, %s2176_s19  ;;  %v1958_v0 = vpop.f32.mrb[13].mxu0 }
 0x489   :  { %v1559_v38 = vpop.f32.mrb[14].mxu0 }
 0x48a   :  { %1657 = vrot.lane.b32.xlu0 %v1559_v38, %s2177_s20  ;;  %v1968_v39 = vpop.f32.mrb[15].mxu0 }
 0x4e3   :  { %v1638_v40 = vpop.permute.xlu1 %1637 }
 0x4e4   :  { %v1664_v42 = vsel %vm370_vm2, %v1121_v20, %v1638_v40 }
 0x4eb   :  { %v1646_v41 = vpop.permute.xlu1 %1645 }
 0x4ef   :  { %v1654_v48 = vpop.permute.xlu1 %1653 }
 0x4f4   :  { %v1642_v43 = vpop.permute.xlu0 %1641 }
 0x4f5   :  { %v1665_v44 = vsel %vm963_vm3, %v1664_v42, %v1642_v43 }
 0x4f6   :  { %v1667_v45 = vsel %vm1666_vm4, %v1665_v44, %v1646_v41  ;;  %v1662_v52 = vpop.permute.xlu1 %1661 }
 0x4f8   :  { %v1650_v46 = vpop.permute.xlu0 %1649 }
 0x4f9   :  { %v1669_v49 = vsel %vm1668_vm5, %v1667_v45, %v1650_v46 }
 0x4fa   :  { %v1671_v50 = vsel %vm1670_vm6, %v1669_v49, %v1654_v48 }
 0x4fc   :  { %v1658_v51 = vpop.permute.xlu0 %1657 }
 0x4fd   :  { %v1673_v53 = vsel %vm1672_vm7, %v1671_v50, %v1658_v51 }
 0x4fe   :  { %v1675_v54 = vsel %vm1674_vm8, %v1673_v53, %v1662_v52 }
 0x4ff   :  { %1983 = vmatmul.mubr.msk.f32.vlgmr.msra.gmra.mrb[16].mxu0 %vm98_vm1, %v1675_v54 }
 0x5d2   :  { %v1756_v56 = vpop.f32.mrb[16].mxu0 }
 0x5d3   :  { %v1757_v57 = vadd.f32 %v1807_v55, %v1756_v56  ;;  %v1984_v58 = vpop.f32.mrb[17].mxu0 }
 0x5d5   :  { %1760 = vst.msk [vmem:[#allocation8] sm:$0xff] %vm98_vm1, %v1757_v57 }
 0x5d6   :  { %2140 = shalt.err (!%p2137_p0)
}
 0x5d7   :  { %s2141_s28 = scalar_lea.hbm %s2441_s5, 128 }
 0x5d8   :  { %p2142_p1 = scmp.ne.s32.totalorder %s2441_s5, %s2141_s28  ;;  %p2145_p2 = scmp.lt.u32.totalorder %s2141_s28, %s2441_s5 }
 0x5da   :  { %p2147_p3 = pnand %p2145_p2, %p2142_p1 }
 0x5dc   :  { %2150 = shalt.err (!%p2147_p3)
}
 0x5dd   :  { %1770 = dma.vmem_to_hbm [thread:$0]  %s1768_s24, 128, %s2441_s5, [#allocation4]  }
 0x5de   :  { %2155 = dma.done.wait [#allocation4], 128  }
 0x5df   :  { %2156 = vsyncadd [#allocation4], 4294967168 }
 0x5e0   :  { %1774 = vsyncpa [#allocation3], 1 }
 0x5e1   :  { %1775 = vsyncpa [#allocation6], 1 }
 0x5e2   :  { %1776 = vsyncpa [#allocation4], 1 }

</bundles_post_ra>
